<compile_context>
chip_gen: v6e
topology: v6e:2x2x1
jax: 0.10.0
libtpu: 0.0.40
codegen_flags: <defaults>
</compile_context>

<pallas_src>
import jax
import jax.numpy as jnp
from jax.experimental import pallas as pl
from jax.experimental.pallas import tpu as pltpu

HIDDEN = 32      # hidden_size
VOCAB = 40       # output_size
MAX_LENGTH = 10  # max_length (encoder sequence length)

NEG = -1e30      # "minus infinity" for padded softmax lanes (exp -> exactly 0)

# ---- weight-slab row layout: (W_ROWS, 128) f32, all offsets multiples of 8 ----
R_WA = 0     # attention weight  : rows 0:H = hidden half, rows H:2H = embed half, cols 0:L
R_WC = 128   # combine weight    : rows 0:H = attn half,   rows H:2H = embed half, cols H:2H
R_WG = 256   # fused GRU weight  : rows 0:H = hidden contrib, rows H:2H = x contrib,
             #                     cols [r 0:H | z H:2H | i_n 2H:3H | h_n 3H:4H]
R_WO = 384   # output projection : rows 0:H, cols 0:V
R_BA = 512   # attn bias    (lanes 0:L, pad lanes = NEG)
R_BC = 520   # combine bias (lanes H:2H)
R_BG = 528   # fused GRU bias [b_ir+b_hr | b_iz+b_hz | b_in | b_hn]
R_BO = 536   # output bias  (lanes 0:V, pad lanes = NEG)
W_ROWS = 544


def _decoder_kernel(tok_ref, emb_ref, enc_ref, w_ref, hinit_ref, out_ref, h_ref):
    """One decoder step per grid iteration; hidden carried in VMEM scratch h_ref."""
    H = HIDDEN
    f32 = jnp.float32
    t = pl.program_id(0)

    @pl.when(t == 0)
    def _():                       # load initial hidden into the carried scratch
        h_ref[...] = hinit_ref[...]

    tok = tok_ref[t]                                     # scalar from SMEM
    emb = emb_ref[pl.ds(tok, 1), :]                      # (1,128): embed in lanes H:2H
    h_row = h_ref[0:1, :]                                # (1,128): hidden in lanes 0:H

    # ---- attention: softmax over [hidden | embed] @ W_A + b_A (padded lanes = NEG) ----
    a = h_row + emb                                      # [hidden 0:H | embed H:2H | 0 | 0]
    attn_pre = (jnp.dot(a, w_ref[R_WA:R_WA + 128, :], preferred_element_type=f32)
                + w_ref[R_BA:R_BA + 1, :])               # (1,128)
    m = jnp.max(attn_pre, axis=1, keepdims=True)
    e = jnp.exp(attn_pre - m)                            # padded lanes -> exactly 0
    attn_w = e / jnp.sum(e, axis=1, keepdims=True)       # exact softmax

    # attn_applied lands in lanes 0:H (enc packed at cols 0:H, rows 0:L)
    attn_applied = jnp.dot(attn_w, enc_ref[...], preferred_element_type=f32)

    # ---- attn_combine + relu; output lands in lanes H:2H (W_C packed at cols H:2H) ----
    c = attn_applied + emb                               # [attn_applied 0:H | embed H:2H]
    x = jnp.maximum(
        jnp.dot(c, w_ref[R_WC:R_WC + 128, :], preferred_element_type=f32)
        + w_ref[R_BC:R_BC + 1, :], 0.0)                  # (1,128): x in lanes H:2H, rest 0

    # ---- single fused GRU-gate matmul ----
    d = h_row + x                                        # [hidden 0:H | x H:2H]
    g = (jnp.dot(d, w_ref[R_WG:R_WG + 128, :], preferred_element_type=f32)
         + w_ref[R_BG:R_BG + 1, :])                      # [r_pre | z_pre | i_n | h_n]
    s = jax.nn.sigmoid(g[:, 0:2 * H])
    r = s[:, 0:H]
    z = s[:, H:2 * H]
    n = jnp.tanh(g[:, 2 * H:3 * H] + r * g[:, 3 * H:4 * H])
    h_new = (1.0 - z) * n + z * h_row[:, 0:H]            # (1, H)

    # carry hidden: lanes H:128 of row 0 stay zero forever (never written after init)
    h_ref[0:1, 0:H] = h_new
    h_full = h_ref[0:1, :]                               # (1,128) zero-padded hidden

    # ---- output projection + log_softmax (padded bias lanes = NEG) ----
    logits = (jnp.dot(h_full, w_ref[R_WO:R_WO + 128, :], preferred_element_type=f32)
              + w_ref[R_BO:R_BO + 1, :])
    mo = jnp.max(logits, axis=1, keepdims=True)
    sh = logits - mo
    logp = sh - jnp.log(jnp.sum(jnp.exp(sh), axis=1, keepdims=True))

    # ---- packed, lane-dense, fully-initialized per-step output block ----
    out_ref[...] = jnp.zeros(out_ref.shape, out_ref.dtype)
    out_ref[0:1, :] = logp                               # lanes 0:V valid
    out_ref[1:2, :] = h_full                             # lanes 0:H valid
    out_ref[2:3, :] = attn_w                             # lanes 0:L valid


# ----------------------------- packing (done ONCE) -----------------------------

def pack_params(p):
    """Pack all weights/biases into one (W_ROWS, 128) f32 slab (math layout in,
    fused lane layout out). Done once; the slab stays resident in VMEM."""
    H, V, L = HIDDEN, VOCAB, MAX_LENGTH
    w = jnp.zeros((W_ROWS, 128), jnp.float32)
    # attention: a = [hidden 0:H | embed H:2H]
    w = w.at[R_WA:R_WA + H, :L].set(p["w_attn"][H:2 * H, :])         # hidden half
    w = w.at[R_WA + H:R_WA + 2 * H, :L].set(p["w_attn"][:H, :])      # embed half
    # combine: c = [attn_applied 0:H | embed H:2H], output in cols H:2H
    w = w.at[R_WC:R_WC + H, H:2 * H].set(p["w_comb"][H:2 * H, :])    # attn half
    w = w.at[R_WC + H:R_WC + 2 * H, H:2 * H].set(p["w_comb"][:H, :]) # embed half
    # fused GRU: d = [hidden 0:H | x H:2H] -> [r_pre | z_pre | i_n | h_n]
    w = w.at[R_WG:R_WG + H, 0:2 * H].set(p["w_hh"][:, 0:2 * H])          # h -> r,z
    w = w.at[R_WG + H:R_WG + 2 * H, 0:2 * H].set(p["w_ih"][:, 0:2 * H])  # x -> r,z
    w = w.at[R_WG + H:R_WG + 2 * H, 2 * H:3 * H].set(p["w_ih"][:, 2 * H:3 * H])  # i_n
    w = w.at[R_WG:R_WG + H, 3 * H:4 * H].set(p["w_hh"][:, 2 * H:3 * H])          # h_n
    # output projection
    w = w.at[R_WO:R_WO + H, :V].set(p["w_out"])
    # biases
    w = w.at[R_BA, :].set(NEG)
    w = w.at[R_BA, :L].set(p["b_attn"])
    w = w.at[R_BC, H:2 * H].set(p["b_comb"])
    w = w.at[R_BG, 0:2 * H].set(p["b_ih"][0:2 * H] + p["b_hh"][0:2 * H])
    w = w.at[R_BG, 2 * H:3 * H].set(p["b_ih"][2 * H:3 * H])
    w = w.at[R_BG, 3 * H:4 * H].set(p["b_hh"][2 * H:3 * H])
    w = w.at[R_BO, :].set(NEG)
    w = w.at[R_BO, :V].set(p["b_out"])
    return w


def pack_embedding(embedding):
    """Embedding table, values pre-shifted into lanes H:2H (no in-kernel roll)."""
    V, H = embedding.shape
    rows = ((V + 7) // 8) * 8
    e = jnp.zeros((rows, 128), jnp.float32)
    return e.at[:V, H:2 * H].set(embedding.astype(jnp.float32))


def pack_encoder_outputs(encoder_outputs):
    """Zero-pad encoder outputs into a (128,128) buffer (rows 0:L, cols 0:H)."""
    enc = jnp.zeros((128, 128), jnp.float32)
    return enc.at[:MAX_LENGTH, :HIDDEN].set(encoder_outputs.astype(jnp.float32))


# ------------------------------- entry point -----------------------------------

@jax.jit
def attention_decoder_decode(w_slab, emb_packed, enc_packed, tokens, hidden_init):
    """Run T teacher-forced decoder steps (each step == one AttentionDecoder.forward).
    Returns (log_probs (T,V), hiddens (T,H), attn_weights (T,L))."""
    H, V, L = HIDDEN, VOCAB, MAX_LENGTH
    T = tokens.shape[0]

    h0 = jnp.zeros((8, 128), jnp.float32).at[0, :H].set(
        hidden_init.reshape(H).astype(jnp.float32))

    const2d = lambda shape: pl.BlockSpec(shape, lambda t, tok: (0, 0))  # resident

    out = pl.pallas_call(
        _decoder_kernel,
        out_shape=jax.ShapeDtypeStruct((T * 8, 128), jnp.float32),
        grid_spec=pltpu.PrefetchScalarGridSpec(
            num_scalar_prefetch=1,                      # tokens -> SMEM
            grid=(T,),
            in_specs=[
                const2d(emb_packed.shape),              # embedding table (resident)
                const2d(enc_packed.shape),              # encoder outputs (resident)
                const2d(w_slab.shape),                  # weight slab     (resident)
                const2d((8, 128)),                      # initial hidden  (resident)
            ],
            out_specs=pl.BlockSpec((8, 128), lambda t, tok: (t, 0)),
            scratch_shapes=[pltpu.VMEM((8, 128), jnp.float32)],  # carried hidden
        ),
        compiler_params=pltpu.CompilerParams(dimension_semantics=("arbitrary",)),
    )(tokens, emb_packed, enc_packed, w_slab, h0)

    out = out.reshape(T, 8, 128)
    log_probs = out[:, 0, :V]
    hiddens = out[:, 1, :H]
    attn_weights = out[:, 2, :L]
    return log_probs, hiddens, attn_weights


# ------------------------------ reference & test --------------------------------

def reference_forward(params, input_token, hidden, encoder_outputs):
    """Pure-JAX reference for ONE decoder step (eval mode, dropout = identity)."""
    H = HIDDEN
    embed = params["embedding"][input_token].reshape(1, H)
    h = hidden.reshape(1, H)
    cat1 = jnp.concatenate([embed, h], axis=1)
    attn_w = jax.nn.softmax(cat1 @ params["w_attn"] + params["b_attn"], axis=1)
    attn_applied = attn_w @ encoder_outputs
    cat2 = jnp.concatenate([embed, attn_applied], axis=1)
    x = jax.nn.relu(cat2 @ params["w_comb"] + params["b_comb"])
    ig = x @ params["w_ih"] + params["b_ih"]
    hg = h @ params["w_hh"] + params["b_hh"]
    r = jax.nn.sigmoid(ig[:, :H] + hg[:, :H])
    z = jax.nn.sigmoid(ig[:, H:2 * H] + hg[:, H:2 * H])
    n = jnp.tanh(ig[:, 2 * H:] + r * hg[:, 2 * H:])
    h_new = (1.0 - z) * n + z * h
    logits = h_new @ params["w_out"] + params["b_out"]
    return jax.nn.log_softmax(logits, axis=1), h_new.reshape(1, 1, H), attn_w


def init_params(key):
    """Params in math layout: weights (in_features, out_features), biases 1-D.
    GRU gates fused into (H, 3H) / (3H,) with column order [r|z|n]."""
    H, V, L = HIDDEN, VOCAB, MAX_LENGTH
    ks = jax.random.split(key, 11)
    u = lambda k, shape, s: jax.random.uniform(k, shape, jnp.float32, -s, s)
    return {
        "embedding": jax.random.normal(ks[0], (V, H), jnp.float32),
        "w_attn": u(ks[1], (2 * H, L), 0.1),
        "b_attn": u(ks[2], (L,), 0.1),
        "w_comb": u(ks[3], (2 * H, H), 0.1),
        "b_comb": u(ks[4], (H,), 0.1),
        "w_ih": u(ks[5], (H, 3 * H), 0.1),
        "w_hh": u(ks[6], (H, 3 * H), 0.1),
        "b_ih": u(ks[7], (3 * H,), 0.1),
        "b_hh": u(ks[8], (3 * H,), 0.1),
        "w_out": u(ks[9], (H, V), 0.1),
        "b_out": u(ks[10], (V,), 0.1),
    }


if __name__ == "__main__":
    key = jax.random.PRNGKey(0)
    kp, kh, ke, kt = jax.random.split(key, 4)

    params = init_params(kp)
    w_slab = pack_params(params)                         # packed ONCE
    emb_packed = pack_embedding(params["embedding"])     # packed ONCE
    hidden0 = jax.random.normal(kh, (1, 1, HIDDEN), jnp.float32)
    encoder_outputs = jax.random.normal(ke, (MAX_LENGTH, HIDDEN), jnp.float32)
    enc_packed = pack_encoder_outputs(encoder_outputs)   # padded once per sequence

    T = 8                                                # decode steps (teacher forced)
    tokens = jax.random.randint(kt, (T,), 0, VOCAB, dtype=jnp.int32)

    logp, hiddens, attn_w = attention_decoder_decode(
        w_slab, emb_packed, enc_packed, tokens, hidden0)
    jax.block_until_ready((logp, hiddens, attn_w))

    # step-by-step pure-JAX reference
    h = hidden0
    for t in range(T):
        ref_logp, h, ref_attn = reference_forward(params, tokens[t], h, encoder_outputs)
        assert jnp.allclose(logp[t], ref_logp[0], atol=2e-3, rtol=2e-3), f"logp step {t}"
        assert jnp.allclose(hiddens[t], h.reshape(HIDDEN), atol=2e-3, rtol=2e-3), f"hidden step {t}"
        assert jnp.allclose(attn_w[t], ref_attn[0], atol=2e-3, rtol=2e-3), f"attn step {t}"

    print("KERNEL_OK")
</pallas_src>

<mosaic_0001>
module attributes {stable_mosaic.version = 11 : i64} {
  func.func @_decoder_kernel(%arg0: i32, %arg1: memref<8xi32, #tpu.memory_space<smem>>, %arg2: memref<40x128xf32, #tpu.memory_space<vmem>>, %arg3: memref<128x128xf32, #tpu.memory_space<vmem>>, %arg4: memref<544x128xf32, #tpu.memory_space<vmem>>, %arg5: memref<8x128xf32, #tpu.memory_space<vmem>>, %arg6: memref<8x128xf32, #tpu.memory_space<vmem>>, %arg7: memref<8x128xf32, #tpu.memory_space<vmem>>) attributes {dimension_semantics = [#tpu.dimension_semantics<arbitrary>], iteration_bounds = array<i64: 8>, scalar_prefetch = 1 : i64, scratch_operands = 1 : i64, tpu.core_type = #tpu.core_type<tc>, window_params = [{pipeline_mode = #tpu.pipeline_mode<synchronous>, transform_indices = @transform_0, window_bounds = array<i64: 40, 128>}, {pipeline_mode = #tpu.pipeline_mode<synchronous>, transform_indices = @transform_1, window_bounds = array<i64: 128, 128>}, {pipeline_mode = #tpu.pipeline_mode<synchronous>, transform_indices = @transform_2, window_bounds = array<i64: 544, 128>}, {pipeline_mode = #tpu.pipeline_mode<synchronous>, transform_indices = @transform_3, window_bounds = array<i64: 8, 128>}, {transform_indices = @transform_4, window_bounds = array<i64: 8, 128>}]} {
    %c0_i32 = arith.constant 0 : i32
    %0 = arith.cmpi eq, %arg0, %c0_i32 : i32
    %1 = arith.extui %0 : i1 to i32
    %c0_i32_0 = arith.constant 0 : i32
    %2 = arith.cmpi ne, %1, %c0_i32_0 : i32
    scf.if %2 {
      %c0_36 = arith.constant 0 : index
      %c0_37 = arith.constant 0 : index
      %76 = vector.load %arg5[%c0_36, %c0_37] : memref<8x128xf32, #tpu.memory_space<vmem>>, vector<8x128xf32>
      %c0_38 = arith.constant 0 : index
      %c0_39 = arith.constant 0 : index
      %77 = vector.load %arg7[%c0_38, %c0_39] : memref<8x128xf32, #tpu.memory_space<vmem>>, vector<8x128xf32>
      tpu.vector_store %arg7[%c0_38, %c0_39], %76 {strides = array<i32>} : memref<8x128xf32, #tpu.memory_space<vmem>>, vector<8x128xf32>,
    } else {
    }
    %3 = arith.index_cast %arg0 : i32 to index
    %4 = memref.load %arg1[%3] : memref<8xi32, #tpu.memory_space<smem>>
    %5 = arith.index_cast %4 : i32 to index
    %c0 = arith.constant 0 : index
    %6 = vector.load %arg2[%5, %c0] : memref<40x128xf32, #tpu.memory_space<vmem>>, vector<1x128xf32>
    %c0_1 = arith.constant 0 : index
    %c0_2 = arith.constant 0 : index
    %7 = vector.load %arg7[%c0_1, %c0_2] : memref<8x128xf32, #tpu.memory_space<vmem>>, vector<1x128xf32>
    %8 = arith.addf %7, %6 : vector<1x128xf32>
    %c0_3 = arith.constant 0 : index
    %c0_4 = arith.constant 0 : index
    %9 = vector.load %arg4[%c0_3, %c0_4] : memref<544x128xf32, #tpu.memory_space<vmem>>, vector<128x128xf32>
    %cst = arith.constant dense<0.000000e+00> : vector<1x128xf32>
    %10 = tpu.matmul %8, %9, %cst {dimension_numbers = #tpu.dot_dimension_numbers<[1], [0], [0], [1], [0, 0, 1, 1], [], []>} : vector<1x128xf32>, vector<128x128xf32>, vector<1x128xf32> -> vector<1x128xf32>
    %c512 = arith.constant 512 : index
    %c0_5 = arith.constant 0 : index
    %11 = vector.load %arg4[%c512, %c0_5] : memref<544x128xf32, #tpu.memory_space<vmem>>, vector<1x128xf32>
    %12 = arith.addf %10, %11 : vector<1x128xf32>
    %cst_6 = arith.constant dense<0xFF800000> : vector<1xf32>
    %13 = vector.multi_reduction <maximumf>, %12, %cst_6 [1] : vector<1x128xf32> to vector<1xf32>
    %14 = vector.shape_cast %13 : vector<1xf32> to vector<1x1xf32>
    %15 = vector.broadcast %14 : vector<1x1xf32> to vector<1x128xf32>
    %16 = arith.subf %12, %15 : vector<1x128xf32>
    %17 = math.exp %16 : vector<1x128xf32>
    %cst_7 = arith.constant dense<0.000000e+00> : vector<1xf32>
    %18 = vector.multi_reduction <add>, %17, %cst_7 [1] : vector<1x128xf32> to vector<1xf32>
    %19 = vector.shape_cast %18 : vector<1xf32> to vector<1x1xf32>
    %20 = vector.broadcast %19 : vector<1x1xf32> to vector<1x128xf32>
    %21 = arith.divf %17, %20 : vector<1x128xf32>
    %c0_8 = arith.constant 0 : index
    %c0_9 = arith.constant 0 : index
    %22 = vector.load %arg3[%c0_8, %c0_9] : memref<128x128xf32, #tpu.memory_space<vmem>>, vector<128x128xf32>
    %cst_10 = arith.constant dense<0.000000e+00> : vector<1x128xf32>
    %23 = tpu.matmul %21, %22, %cst_10 {dimension_numbers = #tpu.dot_dimension_numbers<[1], [0], [0], [1], [0, 0, 1, 1], [], []>} : vector<1x128xf32>, vector<128x128xf32>, vector<1x128xf32> -> vector<1x128xf32>
    %24 = arith.addf %23, %6 : vector<1x128xf32>
    %c128 = arith.constant 128 : index
    %c0_11 = arith.constant 0 : index
    %25 = vector.load %arg4[%c128, %c0_11] : memref<544x128xf32, #tpu.memory_space<vmem>>, vector<128x128xf32>
    %cst_12 = arith.constant dense<0.000000e+00> : vector<1x128xf32>
    %26 = tpu.matmul %24, %25, %cst_12 {dimension_numbers = #tpu.dot_dimension_numbers<[1], [0], [0], [1], [0, 0, 1, 1], [], []>} : vector<1x128xf32>, vector<128x128xf32>, vector<1x128xf32> -> vector<1x128xf32>
    %c520 = arith.constant 520 : index
    %c0_13 = arith.constant 0 : index
    %27 = vector.load %arg4[%c520, %c0_13] : memref<544x128xf32, #tpu.memory_space<vmem>>, vector<1x128xf32>
    %28 = arith.addf %26, %27 : vector<1x128xf32>
    %cst_14 = arith.constant 0.000000e+00 : f32
    %29 = vector.broadcast %cst_14 : f32 to vector<1x128xf32>
    %30 = arith.maximumf %28, %29 : vector<1x128xf32>
    %31 = arith.addf %7, %30 : vector<1x128xf32>
    %c256 = arith.constant 256 : index
    %c0_15 = arith.constant 0 : index
    %32 = vector.load %arg4[%c256, %c0_15] : memref<544x128xf32, #tpu.memory_space<vmem>>, vector<128x128xf32>
    %cst_16 = arith.constant dense<0.000000e+00> : vector<1x128xf32>
    %33 = tpu.matmul %31, %32, %cst_16 {dimension_numbers = #tpu.dot_dimension_numbers<[1], [0], [0], [1], [0, 0, 1, 1], [], []>} : vector<1x128xf32>, vector<128x128xf32>, vector<1x128xf32> -> vector<1x128xf32>
    %c528 = arith.constant 528 : index
    %c0_17 = arith.constant 0 : index
    %34 = vector.load %arg4[%c528, %c0_17] : memref<544x128xf32, #tpu.memory_space<vmem>>, vector<1x128xf32>
    %35 = arith.addf %33, %34 : vector<1x128xf32>
    %36 = vector.extract_strided_slice %35 {offsets = [0, 0], sizes = [1, 64], strides = [1, 1]} : vector<1x128xf32> to vector<1x64xf32>
    %37 = arith.negf %36 : vector<1x64xf32>
    %38 = math.exp %37 : vector<1x64xf32>
    %cst_18 = arith.constant 1.000000e+00 : f32
    %39 = vector.broadcast %cst_18 : f32 to vector<1x64xf32>
    %40 = arith.addf %39, %38 : vector<1x64xf32>
    %41 = arith.divf %39, %40 : vector<1x64xf32>
    %42 = vector.extract_strided_slice %41 {offsets = [0, 0], sizes = [1, 32], strides = [1, 1]} : vector<1x64xf32> to vector<1x32xf32>
    %43 = vector.extract_strided_slice %41 {offsets = [0, 32], sizes = [1, 32], strides = [1, 1]} : vector<1x64xf32> to vector<1x32xf32>
    %44 = vector.extract_strided_slice %35 {offsets = [0, 64], sizes = [1, 32], strides = [1, 1]} : vector<1x128xf32> to vector<1x32xf32>
    %45 = vector.extract_strided_slice %35 {offsets = [0, 96], sizes = [1, 32], strides = [1, 1]} : vector<1x128xf32> to vector<1x32xf32>
    %46 = arith.mulf %42, %45 : vector<1x32xf32>
    %47 = arith.addf %44, %46 : vector<1x32xf32>
    %48 = math.tanh %47 : vector<1x32xf32>
    %cst_19 = arith.constant 1.000000e+00 : f32
    %49 = vector.broadcast %cst_19 : f32 to vector<1x32xf32>
    %50 = arith.subf %49, %43 : vector<1x32xf32>
    %51 = arith.mulf %50, %48 : vector<1x32xf32>
    %52 = vector.extract_strided_slice %7 {offsets = [0, 0], sizes = [1, 32], strides = [1, 1]} : vector<1x128xf32> to vector<1x32xf32>
    %53 = arith.mulf %43, %52 : vector<1x32xf32>
    %54 = arith.addf %51, %53 : vector<1x32xf32>
    %c0_20 = arith.constant 0 : index
    %c0_21 = arith.constant 0 : index
    %55 = vector.load %arg7[%c0_20, %c0_21] : memref<8x128xf32, #tpu.memory_space<vmem>>, vector<1x32xf32>
    tpu.vector_store %arg7[%c0_20, %c0_21], %54 {strides = array<i32>} : memref<8x128xf32, #tpu.memory_space<vmem>>, vector<1x32xf32>,
    %c0_22 = arith.constant 0 : index
    %c0_23 = arith.constant 0 : index
    %56 = vector.load %arg7[%c0_22, %c0_23] : memref<8x128xf32, #tpu.memory_space<vmem>>, vector<1x128xf32>
    %c384 = arith.constant 384 : index
    %c0_24 = arith.constant 0 : index
    %57 = vector.load %arg4[%c384, %c0_24] : memref<544x128xf32, #tpu.memory_space<vmem>>, vector<128x128xf32>
    %cst_25 = arith.constant dense<0.000000e+00> : vector<1x128xf32>
    %58 = tpu.matmul %56, %57, %cst_25 {dimension_numbers = #tpu.dot_dimension_numbers<[1], [0], [0], [1], [0, 0, 1, 1], [], []>} : vector<1x128xf32>, vector<128x128xf32>, vector<1x128xf32> -> vector<1x128xf32>
    %c536 = arith.constant 536 : index
    %c0_26 = arith.constant 0 : index
    %59 = vector.load %arg4[%c536, %c0_26] : memref<544x128xf32, #tpu.memory_space<vmem>>, vector<1x128xf32>
    %60 = arith.addf %58, %59 : vector<1x128xf32>
    %cst_27 = arith.constant dense<0xFF800000> : vector<1xf32>
    %61 = vector.multi_reduction <maximumf>, %60, %cst_27 [1] : vector<1x128xf32> to vector<1xf32>
    %62 = vector.shape_cast %61 : vector<1xf32> to vector<1x1xf32>
    %63 = vector.broadcast %62 : vector<1x1xf32> to vector<1x128xf32>
    %64 = arith.subf %60, %63 : vector<1x128xf32>
    %65 = math.exp %64 : vector<1x128xf32>
    %cst_28 = arith.constant dense<0.000000e+00> : vector<1xf32>
    %66 = vector.multi_reduction <add>, %65, %cst_28 [1] : vector<1x128xf32> to vector<1xf32>
    %67 = vector.shape_cast %66 : vector<1xf32> to vector<1x1xf32>
    %68 = math.log %67 : vector<1x1xf32>
    %69 = vector.broadcast %68 : vector<1x1xf32> to vector<1x128xf32>
    %70 = arith.subf %64, %69 : vector<1x128xf32>
    %cst_29 = arith.constant 0.000000e+00 : f32
    %71 = vector.broadcast %cst_29 : f32 to vector<8x128xf32>
    %c0_30 = arith.constant 0 : index
    %c0_31 = arith.constant 0 : index
    %72 = vector.load %arg6[%c0_30, %c0_31] : memref<8x128xf32, #tpu.memory_space<vmem>>, vector<8x128xf32>
    tpu.vector_store %arg6[%c0_30, %c0_31], %71 {strides = array<i32>} : memref<8x128xf32, #tpu.memory_space<vmem>>, vector<8x128xf32>,
    %c0_32 = arith.constant 0 : index
    %c0_33 = arith.constant 0 : index
    %73 = vector.load %arg6[%c0_32, %c0_33] : memref<8x128xf32, #tpu.memory_space<vmem>>, vector<1x128xf32>
    tpu.vector_store %arg6[%c0_32, %c0_33], %70 {strides = array<i32>} : memref<8x128xf32, #tpu.memory_space<vmem>>, vector<1x128xf32>,
    %c1 = arith.constant 1 : index
    %c0_34 = arith.constant 0 : index
    %74 = vector.load %arg6[%c1, %c0_34] : memref<8x128xf32, #tpu.memory_space<vmem>>, vector<1x128xf32>
    tpu.vector_store %arg6[%c1, %c0_34], %56 {strides = array<i32>} : memref<8x128xf32, #tpu.memory_space<vmem>>, vector<1x128xf32>,
    %c2 = arith.constant 2 : index
    %c0_35 = arith.constant 0 : index
    %75 = vector.load %arg6[%c2, %c0_35] : memref<8x128xf32, #tpu.memory_space<vmem>>, vector<1x128xf32>
    tpu.vector_store %arg6[%c2, %c0_35], %21 {strides = array<i32>} : memref<8x128xf32, #tpu.memory_space<vmem>>, vector<1x128xf32>,
    return
  }
  func.func @transform_0(%arg0: i32, %arg1: memref<8xi32, #tpu.memory_space<smem>>) -> (i32, i32) {
    %c0_i32 = arith.constant 0 : i32
    %c0_i32_0 = arith.constant 0 : i32
    %c0_i32_1 = arith.constant 0 : i32
    return %c0_i32, %c0_i32_0 : i32, i32
  }
  func.func @transform_1(%arg0: i32, %arg1: memref<8xi32, #tpu.memory_space<smem>>) -> (i32, i32) {
    %c0_i32 = arith.constant 0 : i32
    %c0_i32_0 = arith.constant 0 : i32
    %c0_i32_1 = arith.constant 0 : i32
    return %c0_i32, %c0_i32_0 : i32, i32
  }
  func.func @transform_2(%arg0: i32, %arg1: memref<8xi32, #tpu.memory_space<smem>>) -> (i32, i32) {
    %c0_i32 = arith.constant 0 : i32
    %c0_i32_0 = arith.constant 0 : i32
    %c0_i32_1 = arith.constant 0 : i32
    return %c0_i32, %c0_i32_0 : i32, i32
  }
  func.func @transform_3(%arg0: i32, %arg1: memref<8xi32, #tpu.memory_space<smem>>) -> (i32, i32) {
    %c0_i32 = arith.constant 0 : i32
    %c0_i32_0 = arith.constant 0 : i32
    %c0_i32_1 = arith.constant 0 : i32
    return %c0_i32, %c0_i32_0 : i32, i32
  }
  func.func @transform_4(%arg0: i32, %arg1: memref<8xi32, #tpu.memory_space<smem>>) -> (i32, i32) {
    %c0_i32 = arith.constant 0 : i32
    %c0_i32_0 = arith.constant 0 : i32
    return %arg0, %c0_i32 : i32, i32
  }
}

</mosaic_0001>

<bundles_post_ra>
// kernel: attention_decoder_decode.1
= control target key start
LH: loop header
LB: loop body
LE: loop exit
PB: predicated region body
PF: predicated region fallthrough
CT: control target
= control target key end

     0   :  { %s1501_s0 = inlined_call_operand.vmem [shape: s32[8], index: 0, kind: input, shape index: {}]   ;;  %s1502_s1 = inlined_call_operand.hbm [shape: f32[40,128], index: 1, kind: input, shape index: {}]   ;;  %s1503_s2 = inlined_call_operand.hbm [shape: f32[128,128], index: 2, kind: input, shape index: {}]   ;;  %s1504_s3 = inlined_call_operand.hbm [shape: f32[544,128], index: 3, kind: input, shape index: {}]   ;;  %s1505_s4 = inlined_call_operand.vmem [shape: f32[8,128], index: 4, kind: input, shape index: {}]   ;;  %s1506_s5 = inlined_call_operand.vmem [shape: f32[64,128], index: 5, kind: output, shape index: {}]  }
   0x1   :  { %s10_s20 = sshll.u32 %s1501_s0, 4  ;;  %s11_s20 = int_to_ptr.vmem [resolvable:$true] %s10_s20 }
   0x2   :  { %s1147_s21 = scalar_lea.vmem %s11_s20, 16  ;;  %p1152_p1 = scmp.lt.s32.totalorder %s11_s20, %s11_s20 }
   0x3   :  { %p1148_p0 = scmp.ne.s32.totalorder %s11_s20, %s1147_s21  ;;  %p1153_p2 = scmp.lt.s32.totalorder %s1147_s21, %s1147_s21 }
   0x5   :  { %p1154_p3 = por %p1153_p2, %p1152_p1 }
   0x7   :  { %p1155_p4 = pnand %p1154_p3, %p1148_p0 }
   0x9   :  { %1158 = shalt.err (!%p1155_p4)  }
   0xa   :  { %s1255_s22 = smov [#allocation4]  }
   0xb   :  { %13 = dma.vmem_to_smem %s11_s20, 16, %s1255_s22, [#allocation3] }
   0xc   :  { %1241 = dma.done.wait [#allocation3], 16 }
   0xd   :  { %1242 = vsyncadd [#allocation3], 4294967280 }
   0xe   :  { %15 = sfence }
   0xf   :  { %16 = vsyncpa [#allocation6], 0 }
  0x10   :  { %17 = vsyncpa [#allocation8], 0  ;;  %s1299_s23 = smov 0  }
  0x11 LB: > { %s1305_s0 = sadd.s32 4294967295, %s1253_s23   ;;  %p813_p5 = scmp.ge.s32.totalorder %s1253_s23, 1  ;;  %s1253_s23 = sphi %s1299_s23, %s23_s23  }
  0x12   : > { %p138_p6 = scmp.lt.s32.totalorder %s1253_s23, 9  ;;  %p1108_p8 = scmp.eq.s32.totalorder %s1305_s0, 0 }
  0x13   : > { %s1256_s25 = smov [#allocation7]   ;;  %s1257_s27 = smov [#allocation5]  }
  0x14   : > { %p1311_p9 = pnand %p813_p5, %p138_p6  ;;  %s163_s26 = sshll.u32 %s1256_s25, 4  ;;  %s164_s26 = int_to_ptr.vmem [resolvable:$true] %s163_s26 }
  0x15   : > { %s150_s28 = sshll.u32 %s1257_s27, 4  ;;  %s1258_s30 = smov [#allocation9]   ;;  %s151_s28 = int_to_ptr.vmem [resolvable:$true] %s150_s28 }
  0x16   : > { %p1098_p10 = pneg %p1311_p9  ;;  %s176_s6 = sshll.u32 %s1258_s30, 4  ;;  %s1323_s6 = int_to_ptr.vmem [resolvable:$true] %s176_s6 }
  0x17   : > { %s1170_s7 = scalar_lea.vmem %s164_s26, 2048  ;;  %p1178_p2 = scmp.lt.s32.totalorder %s164_s26, %s164_s26 }
  0x18   : > { %p1319_p11 = pnand %p1108_p8, %p1098_p10  ;;  %p1171_p13 = scmp.ne.s32.totalorder %s164_s26, %s1170_s7 }
  0x19   : > { %p1179_p3 = scmp.lt.s32.totalorder %s1170_s7, %s1170_s7 }
  0x1a   : > { %p1161_p12 = pneg %p1319_p11 }
  0x1b   : > { %p1180_p4 = por %p1179_p3, %p1178_p2 }
  0x1c   : > { %p1173_p0 = pnand %p1171_p13, %p1161_p12 }
  0x1e   : > { %p1174_p1 = pneg %p1173_p0 }
  0x20   : > { %p1181_p5 = pnand %p1180_p4, %p1174_p1 }
  0x22   : > { %1184 = shalt.err (!%p1181_p5)
}
  0x23   : > { %s1259_s8 = smov 128   ;;  %s1260_s9 = smov 8  }
  0x24   : > { %1104 = dma.hbm_to_vmem [thread:$0]  (!%p1319_p11), %s1503_s2, 2048, %s164_s26, [#allocation8], %s1259_s8, %s1259_s8, %s1260_s9  }
  0x25   : > { %s1196_s12 = scalar_lea.vmem %s151_s28, 640  ;;  %p1204_p0 = scmp.lt.s32.totalorder %s151_s28, %s151_s28 }
  0x26   : > { %p1197_p6 = scmp.ne.s32.totalorder %s151_s28, %s1196_s12  ;;  %p1205_p7 = scmp.lt.s32.totalorder %s1196_s12, %s1196_s12 }
  0x28   : > { %p1199_p10 = pnand %p1197_p6, %p1161_p12  ;;  %p1206_p2 = por %p1205_p7, %p1204_p0 }
  0x2a   : > { %p1200_p13 = pneg %p1199_p10 }
  0x2c   : > { %p1207_p1 = pnand %p1206_p2, %p1200_p13 }
  0x2e   : > { %1210 = shalt.err (!%p1207_p1)
}
  0x2f   : > { %1101 = dma.hbm_to_vmem [thread:$0]  (!%p1319_p11), %s1502_s1, 640, %s151_s28, [#allocation6], %s1259_s8, %s1259_s8, %s1260_s9  }
  0x30   : > { %s1222_s15 = scalar_lea.vmem %s1323_s6, 8704  ;;  %p1230_p7 = scmp.lt.s32.totalorder %s1323_s6, %s1323_s6 }
  0x31   : > { %p1223_p3 = scmp.ne.s32.totalorder %s1323_s6, %s1222_s15  ;;  %p1231_p6 = scmp.lt.s32.totalorder %s1222_s15, %s1222_s15 }
  0x33   : > { %p1225_p4 = pnand %p1223_p3, %p1161_p12  ;;  %p1232_p10 = por %p1231_p6, %p1230_p7 }
  0x35   : > { %p1226_p5 = pneg %p1225_p4 }
  0x37   : > { %p1233_p13 = pnand %p1232_p10, %p1226_p5 }
  0x39   : > { %1236 = shalt.err (!%p1233_p13)
}
  0x3a   : > { %1107 = dma.hbm_to_vmem [thread:$0]  (!%p1319_p11), %s1504_s3, 8704, %s1323_s6, [#allocation8], %s1259_s8, %s1259_s8, %s1260_s9  }
  0x3b   : > { %195 = sbr.rel (%p1311_p9) target bundleno = 2206 (0x89e), region = 36 }
  0x40   : > { %1244 = dma.done.wait (%p1108_p8), [#allocation6], 640  }
  0x41   : > { %1246 = vsyncadd (%p1108_p8), [#allocation6], 4294966656 }
  0x42   : > { %1248 = dma.done.wait (%p1108_p8), [#allocation8], 10752  }
  0x43   : > { %1250 = vsyncadd (%p1108_p8), [#allocation8], 4294956544  ;;  %p223_p12 = scmp.lt.s32.totalorder %s1305_s0, 7  ;;  %p1509_p9 = scmp.ne.s32.totalorder %s1305_s0, 0 }
  0x45   : > { %s224_s18 = scalar_select %p223_p12, %s1305_s0, 7 }
  0x46   : > { %230 = sbr.rel (%p1509_p9) target bundleno = 77 (0x4d), region = 52 }
  0x47   : > { %s821_s19 = sshll.u32 %s224_s18, 3 }
  0x48   : > { %s1371_s22 = scalar_lea.vmem %s1506_s5, %s821_s19 }
  0x4b   : > { %v231_v0 = vld [vmem:[%s1505_s4] sm:$0xff] }
  0x4c   : > { %232 = vst [vmem:[#allocation2] sm:$0xff] %v231_v0 }
  0x4d PF: > { %v253_v1 = vld [vmem:[#allocation9 + $0x78] sm:$0xff]  ;;  %v1261_v2 = vmov 0.0   ;;  %v252_v3 = vld [vmem:[#allocation9 + $0x70] sm:$0xff]  ;;  %vm1262_vm0 = vmmov 0   ;;  %v251_v4 = vld [vmem:[#allocation9 + $0x68] sm:$0xff]  ;;  %s233_s26 = sld [smem:[#allocation4 + %s1305_s0]] }
  0x4e   : > { %911 = vmatprep.subr.mxu0 %v1261_v2  ;;  %734 = vst [vmem:[%s1371_s22] sm:$0xff] %v1261_v2  ;;  %943 = vmatprep.mubr.msk.f32.mxu0 %vm1262_vm0, %v1261_v2  ;;  %v250_v5 = vld [vmem:[#allocation9 + $0x60] sm:$0xff]  ;;  %v249_v6 = vld [vmem:[#allocation9 + $0x58] sm:$0xff]  ;;  %v248_v7 = vld [vmem:[#allocation9 + $0x50] sm:$0xff]  ;;  %vm325_vm1 = vcmask 1040384   ;;  %s1263_s27 = smov 32   ;;  %s1264_s28 = smov 64  }
  0x4f   : > { %912 = vmatpush3.msra.mxu0 %v253_v1  ;;  %946 = vmatprep.subr.mxu1 %v1261_v2  ;;  %v247_v8 = vld [vmem:[#allocation9 + $0x48] sm:$0xff]  ;;  %v246_v9 = vld [vmem:[#allocation9 + $0x40] sm:$0xff]  ;;  %v245_v10 = vld [vmem:[#allocation9 + $0x38] sm:$0xff]  ;;  %s1265_s29 = smov 96   ;;  %vm632_vm2 = vcmask 253952  }
  0x50   : > { %913 = vmatprep.subr.mxu0 %v1261_v2  ;;  %978 = vmatprep.mubr.msk.f32.mxu1 %vm1262_vm0, %v1261_v2  ;;  %v244_v11 = vld [vmem:[#allocation9 + $0x30] sm:$0xff]  ;;  %v243_v12 = vld [vmem:[#allocation9 + $0x28] sm:$0xff]  ;;  %v242_v13 = vld [vmem:[#allocation9 + $0x20] sm:$0xff] }
  0x51   : > { %914 = vmatpush3.msra.mxu0 %v252_v3  ;;  %v241_v14 = vld [vmem:[#allocation9 + $0x18] sm:$0xff]  ;;  %v240_v15 = vld [vmem:[#allocation9 + $0x10] sm:$0xff]  ;;  %v239_v18 = vld [vmem:[#allocation9 + $0x8] sm:$0xff] }
  0x52   : > { %915 = vmatprep.subr.mxu0 %v1261_v2  ;;  %v238_v19 = vld [vmem:[#allocation9] sm:$0xff]  ;;  %v352_v26 = vld [vmem:[#allocation7 + $0x78] sm:$0xff]  ;;  %v351_v27 = vld [vmem:[#allocation7 + $0x70] sm:$0xff] }
  0x53   : > { %916 = vmatpush3.msra.mxu0 %v251_v4  ;;  %s234_s0 = scalar_lea.vmem [#allocation5], %s233_s26  ;;  %v1401_v17 = vld [vmem:[#allocation2] sm:$0x1]  ;;  %v254_v21 = vld [vmem:[#allocation9 + $0x200] sm:$0x1]  ;;  %947 = vmatpush3.msra.mxu1 %v352_v26  ;;  %v350_v28 = vld [vmem:[#allocation7 + $0x68] sm:$0xff] }
  0x54   : > { %917 = vmatprep.subr.mxu0 %v1261_v2  ;;  %v1399_v16 = vld [vmem:[%s234_s0] sm:$0x1]  ;;  %948 = vmatprep.subr.mxu1 %v1261_v2  ;;  %v349_v29 = vld [vmem:[#allocation7 + $0x60] sm:$0xff]  ;;  %v348_v30 = vld [vmem:[#allocation7 + $0x58] sm:$0xff] }
  0x55   : > { %918 = vmatpush3.msra.mxu0 %v250_v5  ;;  %v237_v20 = vadd.f32 %v1401_v17, %v1399_v16  ;;  %949 = vmatpush3.msra.mxu1 %v351_v27  ;;  %v347_v31 = vld [vmem:[#allocation7 + $0x50] sm:$0xff]  ;;  %v346_v32 = vld [vmem:[#allocation7 + $0x48] sm:$0xff]  ;;  %v345_v33 = vld [vmem:[#allocation7 + $0x40] sm:$0xff] }
  0x56   : > { %919 = vmatprep.subr.mxu0 %v1261_v2  ;;  %950 = vmatprep.subr.mxu1 %v1261_v2  ;;  %v344_v39 = vld [vmem:[#allocation7 + $0x38] sm:$0xff]  ;;  %v343_v40 = vld [vmem:[#allocation7 + $0x30] sm:$0xff]  ;;  %v342_v41 = vld [vmem:[#allocation7 + $0x28] sm:$0xff] }
  0x57   : > { %920 = vmatpush3.msra.mxu0 %v249_v6  ;;  %951 = vmatpush3.msra.mxu1 %v350_v28  ;;  %v341_v42 = vld [vmem:[#allocation7 + $0x20] sm:$0xff]  ;;  %v340_v43 = vld [vmem:[#allocation7 + $0x18] sm:$0xff]  ;;  %v339_v44 = vld [vmem:[#allocation7 + $0x10] sm:$0xff] }
  0x58   : > { %921 = vmatprep.subr.mxu0 %v1261_v2  ;;  %952 = vmatprep.subr.mxu1 %v1261_v2  ;;  %v338_v45 = vld [vmem:[#allocation7 + $0x8] sm:$0xff]  ;;  %v337_v46 = vld [vmem:[#allocation7] sm:$0xff]  ;;  %v438_v47 = vld [vmem:[#allocation9 + $0xf8] sm:$0xff] }
  0x59   : > { %922 = vmatpush3.msra.mxu0 %v248_v7  ;;  %953 = vmatpush3.msra.mxu1 %v349_v29  ;;  %v437_v48 = vld [vmem:[#allocation9 + $0xf0] sm:$0xff]  ;;  %v436_v49 = vld [vmem:[#allocation9 + $0xe8] sm:$0xff]  ;;  %v435_v50 = vld [vmem:[#allocation9 + $0xe0] sm:$0xff] }
  0x5a   : > { %923 = vmatprep.subr.mxu0 %v1261_v2  ;;  %954 = vmatprep.subr.mxu1 %v1261_v2  ;;  %v434_v51 = vld [vmem:[#allocation9 + $0xd8] sm:$0xff]  ;;  %v433_v52 = vld [vmem:[#allocation9 + $0xd0] sm:$0xff]  ;;  %v432_v53 = vld [vmem:[#allocation9 + $0xc8] sm:$0xff] }
  0x5b   : > { %924 = vmatpush3.msra.mxu0 %v247_v8  ;;  %955 = vmatpush3.msra.mxu1 %v348_v30  ;;  %v431_v54 = vld [vmem:[#allocation9 + $0xc0] sm:$0xff]  ;;  %v430_v55 = vld [vmem:[#allocation9 + $0xb8] sm:$0xff]  ;;  %v429_v56 = vld [vmem:[#allocation9 + $0xb0] sm:$0xff] }
  0x5c   : > { %925 = vmatprep.subr.mxu0 %v1261_v2  ;;  %956 = vmatprep.subr.mxu1 %v1261_v2  ;;  %v428_v57 = vld [vmem:[#allocation9 + $0xa8] sm:$0xff]  ;;  %v427_v58 = vld [vmem:[#allocation9 + $0xa0] sm:$0xff]  ;;  %v426_v59 = vld [vmem:[#allocation9 + $0x98] sm:$0xff] }
  0x5d   : > { %926 = vmatpush3.msra.mxu0 %v246_v9  ;;  %957 = vmatpush3.msra.mxu1 %v347_v31  ;;  %v425_v60 = vld [vmem:[#allocation9 + $0x90] sm:$0xff]  ;;  %v424_v0 = vld [vmem:[#allocation9 + $0x88] sm:$0xff]  ;;  %v423_v1 = vld [vmem:[#allocation9 + $0x80] sm:$0xff] }
  0x5e   : > { %927 = vmatprep.subr.mxu0 %v1261_v2  ;;  %958 = vmatprep.subr.mxu1 %v1261_v2  ;;  %v527_v3 = vld [vmem:[#allocation9 + $0x178] sm:$0xff]  ;;  %v526_v4 = vld [vmem:[#allocation9 + $0x170] sm:$0xff]  ;;  %v525_v5 = vld [vmem:[#allocation9 + $0x168] sm:$0xff] }
  0x5f   : > { %928 = vmatpush3.msra.mxu0 %v245_v10  ;;  %959 = vmatpush3.msra.mxu1 %v346_v32  ;;  %v524_v6 = vld [vmem:[#allocation9 + $0x160] sm:$0xff]  ;;  %v523_v7 = vld [vmem:[#allocation9 + $0x158] sm:$0xff]  ;;  %v522_v8 = vld [vmem:[#allocation9 + $0x150] sm:$0xff] }
  0x60   : > { %929 = vmatprep.subr.mxu0 %v1261_v2  ;;  %960 = vmatprep.subr.mxu1 %v1261_v2  ;;  %v521_v9 = vld [vmem:[#allocation9 + $0x148] sm:$0xff]  ;;  %v520_v10 = vld [vmem:[#allocation9 + $0x140] sm:$0xff]  ;;  %v528_v29 = vld [vmem:[#allocation9 + $0x210] sm:$0x1] }
  0x61   : > { %930 = vmatpush3.msra.mxu0 %v244_v11  ;;  %961 = vmatpush3.msra.mxu1 %v345_v33  ;;  %v519_v11 = vld [vmem:[#allocation9 + $0x138] sm:$0xff] }
  0x62   : > { %931 = vmatprep.subr.mxu0 %v1261_v2  ;;  %962 = vmatprep.subr.mxu1 %v1261_v2 }
  0x63   : > { %932 = vmatpush3.msra.mxu0 %v243_v12  ;;  %963 = vmatpush3.msra.mxu1 %v344_v39  ;;  %v518_v12 = vld [vmem:[#allocation9 + $0x130] sm:$0xff] }
  0x64   : > { %933 = vmatprep.subr.mxu0 %v1261_v2  ;;  %964 = vmatprep.subr.mxu1 %v1261_v2 }
  0x65   : > { %934 = vmatpush3.msra.mxu0 %v242_v13  ;;  %965 = vmatpush3.msra.mxu1 %v343_v40  ;;  %v517_v13 = vld [vmem:[#allocation9 + $0x128] sm:$0xff] }
  0x66   : > { %935 = vmatprep.subr.mxu0 %v1261_v2  ;;  %966 = vmatprep.subr.mxu1 %v1261_v2 }
  0x67   : > { %936 = vmatpush3.msra.mxu0 %v241_v14  ;;  %967 = vmatpush3.msra.mxu1 %v342_v41  ;;  %v516_v14 = vld [vmem:[#allocation9 + $0x120] sm:$0xff]  ;;  %v650_v41 = vld [vmem:[#allocation9 + $0x1f8] sm:$0xff] }
  0x68   : > { %937 = vmatprep.subr.mxu0 %v1261_v2  ;;  %968 = vmatprep.subr.mxu1 %v1261_v2 }
  0x69   : > { %938 = vmatpush3.msra.mxu0 %v240_v15  ;;  %969 = vmatpush3.msra.mxu1 %v341_v42  ;;  %v649_v42 = vld [vmem:[#allocation9 + $0x1f0] sm:$0xff] }
  0x6a   : > { %939 = vmatprep.subr.mxu0 %v1261_v2  ;;  %970 = vmatprep.subr.mxu1 %v1261_v2 }
  0x6b   : > { %940 = vmatpush3.msra.mxu0 %v239_v18  ;;  %971 = vmatpush3.msra.mxu1 %v340_v43  ;;  %v648_v43 = vld [vmem:[#allocation9 + $0x1e8] sm:$0xff] }
  0x6c   : > { %941 = vmatprep.subr.mxu0 %v1261_v2  ;;  %972 = vmatprep.subr.mxu1 %v1261_v2 }
  0x6d   : > { %942 = vmatpush3.msra.mxu0 %v238_v19  ;;  %973 = vmatpush3.msra.mxu1 %v339_v44  ;;  %v647_v44 = vld [vmem:[#allocation9 + $0x1e0] sm:$0xff] }
  0x6e   : > { %944 = vmatmul.mubr.f32.vlgmr.msra.gmra.mxu0 %v237_v20  ;;  %981 = vmatprep.subr.mxu0 %v1261_v2  ;;  %v515_v20 = vld [vmem:[#allocation9 + $0x118] sm:$0xff] }
  0x6f   : > { %1013 = vmatprep.mubr.msk.f32.mxu0 %vm1262_vm0, %v1261_v2  ;;  %974 = vmatprep.subr.mxu1 %v1261_v2 }
  0x70   : > { %975 = vmatpush3.msra.mxu1 %v338_v45  ;;  %982 = vmatpush3.msra.mxu0 %v438_v47  ;;  %v646_v45 = vld [vmem:[#allocation9 + $0x1d8] sm:$0xff]  ;;  %v644_v47 = vld [vmem:[#allocation9 + $0x1c8] sm:$0xff] }
  0x71   : > { %976 = vmatprep.subr.mxu1 %v1261_v2  ;;  %983 = vmatprep.subr.mxu0 %v1261_v2 }
  0x72   : > { %977 = vmatpush3.msra.mxu1 %v337_v46  ;;  %984 = vmatpush3.msra.mxu0 %v437_v48  ;;  %v643_v48 = vld [vmem:[#allocation9 + $0x1c0] sm:$0xff] }
  0x73   : > { %1016 = vmatprep.subr.mxu1 %v1261_v2  ;;  %985 = vmatprep.subr.mxu0 %v1261_v2 }
  0x74   : > { %986 = vmatpush3.msra.mxu0 %v436_v49  ;;  %v642_v49 = vld [vmem:[#allocation9 + $0x1b8] sm:$0xff] }
  0x75   : > { %987 = vmatprep.subr.mxu0 %v1261_v2 }
  0x76   : > { %988 = vmatpush3.msra.mxu0 %v435_v50  ;;  %v641_v50 = vld [vmem:[#allocation9 + $0x1b0] sm:$0xff] }
  0x77   : > { %989 = vmatprep.subr.mxu0 %v1261_v2 }
  0x78   : > { %990 = vmatpush3.msra.mxu0 %v434_v51  ;;  %v640_v51 = vld [vmem:[#allocation9 + $0x1a8] sm:$0xff] }
  0x79   : > { %991 = vmatprep.subr.mxu0 %v1261_v2 }
  0x7a   : > { %992 = vmatpush3.msra.mxu0 %v433_v52  ;;  %v639_v52 = vld [vmem:[#allocation9 + $0x1a0] sm:$0xff] }
  0x7b   : > { %993 = vmatprep.subr.mxu0 %v1261_v2 }
  0x7c   : > { %994 = vmatpush3.msra.mxu0 %v432_v53  ;;  %v638_v53 = vld [vmem:[#allocation9 + $0x198] sm:$0xff] }
  0x7d   : > { %995 = vmatprep.subr.mxu0 %v1261_v2 }
  0x7e   : > { %996 = vmatpush3.msra.mxu0 %v431_v54  ;;  %v637_v54 = vld [vmem:[#allocation9 + $0x190] sm:$0xff] }
  0x7f   : > { %997 = vmatprep.subr.mxu0 %v1261_v2 }
  0x80   : > { %998 = vmatpush3.msra.mxu0 %v430_v55  ;;  %v636_v55 = vld [vmem:[#allocation9 + $0x188] sm:$0xff] }
  0x81   : > { %999 = vmatprep.subr.mxu0 %v1261_v2 }
  0x82   : > { %1000 = vmatpush3.msra.mxu0 %v429_v56  ;;  %v635_v56 = vld [vmem:[#allocation9 + $0x180] sm:$0xff] }
  0x83   : > { %1001 = vmatprep.subr.mxu0 %v1261_v2 }
  0x84   : > { %1002 = vmatpush3.msra.mxu0 %v428_v57 }
  0x85   : > { %1003 = vmatprep.subr.mxu0 %v1261_v2 }
  0x86   : > { %1004 = vmatpush3.msra.mxu0 %v427_v58 }
  0x87   : > { %1005 = vmatprep.subr.mxu0 %v1261_v2 }
  0x88   : > { %1006 = vmatpush3.msra.mxu0 %v426_v59 }
  0x89   : > { %1007 = vmatprep.subr.mxu0 %v1261_v2 }
  0x8a   : > { %1008 = vmatpush3.msra.mxu0 %v425_v60 }
  0x8b   : > { %1009 = vmatprep.subr.mxu0 %v1261_v2 }
  0x8c   : > { %1010 = vmatpush3.msra.mxu0 %v424_v0 }
  0x8d   : > { %1011 = vmatprep.subr.mxu0 %v1261_v2 }
  0x8e   : > { %1012 = vmatpush3.msra.mxu0 %v423_v1  ;;  %v651_v1 = vld [vmem:[#allocation9 + $0x218] sm:$0x1] }
  0x8f   : > { %1051 = vmatprep.subr.mxu0 %v1261_v2 }
 0x12e   : > { %v321_v22 = vpop.f32.mrf.mxu0 }
 0x12f   : > { %v322_v23 = vadd.f32 %v321_v22, %v254_v21  ;;  %v514_v21 = vld [vmem:[#allocation9 + $0x110] sm:$0xff]  ;;  %v513_v22 = vld [vmem:[#allocation9 + $0x108] sm:$0xff] }
 0x130   : > { %v945_v24 = vpop.f32.mrf.mxu0 }
 0x131   : > { %v326_v25 = vsel %vm325_vm1, %v322_v23, -inf }
 0x132   : > { %327 = vmax.xlane.f32.xlu0 %v326_v25 }
 0x1bb   : > { %v328_v34 = vpop.xlane.xlu0 %327 }
 0x1bc   : > { %v329_v35 = vsub.f32 %v322_v23, %v328_v34  ;;  %v512_v23 = vld [vmem:[#allocation9 + $0x100] sm:$0xff] }
 0x1be   : > { %v330_v36 = vmul.f32 1.442695, %v329_v35 }
 0x1c0   : > { %1133 = vpow2.f32 %v330_v36 }
 0x1cd   : > { %v1420_v37 = vpop.eup %1133 }
 0x1ce   : > { %v332_v38 = vsel %vm325_vm1, %v1420_v37, 0.0 }
 0x1cf   : > { %333 = vadd.xlane.f32.xlu0 %v332_v38 }
 0x258   : > { %v334_v61 = vpop.xlane.xlu0 %333 }
 0x259   : > { %1135 = vrcp.f32 %v334_v61 }
 0x266   : > { %v1136_v62 = vpop.eup %1135 }
 0x267   : > { %v336_v63 = vmul.f32 %v1136_v62, %v1420_v37 }
 0x269   : > { %979 = vmatmul.mubr.f32.vlgmr.msra.gmra.mxu1 %v336_v63  ;;  %737 = vst [vmem:[%s1371_s22 + $0x2] sm:$0x1] %v336_v63 }
 0x26a   : > { %1048 = vmatprep.mubr.msk.f32.mxu1 %vm1262_vm0, %v1261_v2  ;;  %1017 = vmatpush3.msra.mxu1 %v527_v3 }
 0x26b   : > { %1018 = vmatprep.subr.mxu1 %v1261_v2 }
 0x26c   : > { %1019 = vmatpush3.msra.mxu1 %v526_v4 }
 0x26d   : > { %1020 = vmatprep.subr.mxu1 %v1261_v2 }
 0x26e   : > { %1021 = vmatpush3.msra.mxu1 %v525_v5 }
 0x26f   : > { %1022 = vmatprep.subr.mxu1 %v1261_v2 }
 0x270   : > { %1023 = vmatpush3.msra.mxu1 %v524_v6 }
 0x271   : > { %1024 = vmatprep.subr.mxu1 %v1261_v2 }
 0x272   : > { %1025 = vmatpush3.msra.mxu1 %v523_v7 }
 0x273   : > { %1026 = vmatprep.subr.mxu1 %v1261_v2 }
 0x274   : > { %1027 = vmatpush3.msra.mxu1 %v522_v8 }
 0x275   : > { %1028 = vmatprep.subr.mxu1 %v1261_v2 }
 0x276   : > { %1029 = vmatpush3.msra.mxu1 %v521_v9 }
 0x277   : > { %1030 = vmatprep.subr.mxu1 %v1261_v2 }
 0x278   : > { %1031 = vmatpush3.msra.mxu1 %v520_v10 }
 0x279   : > { %1032 = vmatprep.subr.mxu1 %v1261_v2 }
 0x27a   : > { %1033 = vmatpush3.msra.mxu1 %v519_v11 }
 0x27b   : > { %1034 = vmatprep.subr.mxu1 %v1261_v2 }
 0x27c   : > { %1035 = vmatpush3.msra.mxu1 %v518_v12 }
 0x27d   : > { %1036 = vmatprep.subr.mxu1 %v1261_v2 }
 0x27e   : > { %1037 = vmatpush3.msra.mxu1 %v517_v13 }
 0x27f   : > { %1038 = vmatprep.subr.mxu1 %v1261_v2 }
 0x280   : > { %1039 = vmatpush3.msra.mxu1 %v516_v14 }
 0x281   : > { %1040 = vmatprep.subr.mxu1 %v1261_v2 }
 0x282   : > { %1041 = vmatpush3.msra.mxu1 %v515_v20 }
 0x283   : > { %1042 = vmatprep.subr.mxu1 %v1261_v2 }
 0x284   : > { %1043 = vmatpush3.msra.mxu1 %v514_v21 }
 0x285   : > { %1044 = vmatprep.subr.mxu1 %v1261_v2 }
 0x286   : > { %1045 = vmatpush3.msra.mxu1 %v513_v22 }
 0x287   : > { %1046 = vmatprep.subr.mxu1 %v1261_v2 }
 0x288   : > { %1047 = vmatpush3.msra.mxu1 %v512_v23 }
 0x329   : > { %v419_v15 = vpop.f32.mrf.mxu1 }
 0x32a   : > { %v420_v18 = vadd.f32 %v419_v15, %v1399_v16  ;;  %v439_v16 = vld [vmem:[#allocation9 + $0x208] sm:$0x1] }
 0x32b   : > { %v980_v19 = vpop.f32.mrf.mxu1 }
 0x32c   : > { %1014 = vmatmul.mubr.f32.vlgmr.msra.gmra.mxu0 %v420_v18 }
 0x32d   : > { %1083 = vmatprep.mubr.msk.f32.mxu0 %vm1262_vm0, %v1261_v2  ;;  %1052 = vmatpush3.msra.mxu0 %v650_v41 }
 0x32e   : > { %1053 = vmatprep.subr.mxu0 %v1261_v2 }
 0x32f   : > { %1054 = vmatpush3.msra.mxu0 %v649_v42 }
 0x330   : > { %1055 = vmatprep.subr.mxu0 %v1261_v2 }
 0x331   : > { %1056 = vmatpush3.msra.mxu0 %v648_v43 }
 0x332   : > { %1057 = vmatprep.subr.mxu0 %v1261_v2 }
 0x333   : > { %1058 = vmatpush3.msra.mxu0 %v647_v44 }
 0x334   : > { %1059 = vmatprep.subr.mxu0 %v1261_v2 }
 0x335   : > { %1060 = vmatpush3.msra.mxu0 %v646_v45 }
 0x336   : > { %1061 = vmatprep.subr.mxu0 %v1261_v2 }
 0x3ec   : > { %v506_v24 = vpop.f32.mrf.mxu0 }
 0x3ed   : > { %v507_v25 = vadd.f32 %v506_v24, %v439_v16 }
 0x3ee   : > { %v1015_v26 = vpop.f32.mrf.mxu0 }
 0x3ef   : > { %v510_v27 = vmax.f32 %v507_v25, 0.0 }
 0x3f1   : > { %v511_v28 = vadd.f32 %v510_v27, %v1401_v17 }
 0x3f3   : > { %1049 = vmatmul.mubr.f32.vlgmr.msra.gmra.mxu1 %v511_v28 }
 0x4b3   : > { %v595_v30 = vpop.f32.mrf.mxu1 }
 0x4b4   : > { %v596_v31 = vadd.f32 %v595_v30, %v528_v29 }
 0x4b5   : > { %v1050_v32 = vpop.f32.mrf.mxu1 }
 0x4b6   : > { %606 = vrot.lane.b32.xlu1 %v596_v31, %s1263_s27  ;;  %v823_v33 = vmul.f32 -1.442695, %v596_v31 }
 0x4b8   : > { %1137 = vpow2.f32 %v823_v33 }
 0x4c5   : > { %v1138_v34 = vpop.eup %1137 }
 0x4c6   : > { %v602_v35 = vadd.f32 1.0, %v1138_v34 }
 0x4c8   : > { %1139 = vrcp.f32 %v602_v35 }
 0x4d5   : > { %v1471_v36 = vpop.eup %1139 }
 0x4d6   : > { %v616_v58 = vsub.f32 1.0, %v1471_v36 }
 0x528   : > { %v607_v37 = vpop.permute.xlu1 %606 }
 0x529   : > { %v609_v38 = vmul.f32 %v1471_v36, %v607_v37 }
 0x52b   : > { %611 = vrot.lane.b32.xlu1 %v609_v38, %s1264_s28 }
 0x52f   : > { %623 = vrot.lane.b32.xlu1 %v1401_v17, %s1263_s27  ;;  %v645_v17 = vld [vmem:[#allocation9 + $0x1d0] sm:$0xff] }
 0x530   : > { %1062 = vmatpush3.msra.mxu0 %v645_v17 }
 0x531   : > { %1063 = vmatprep.subr.mxu0 %v1261_v2 }
 0x532   : > { %1064 = vmatpush3.msra.mxu0 %v644_v47 }
 0x533   : > { %1065 = vmatprep.subr.mxu0 %v1261_v2 }
 0x534   : > { %1066 = vmatpush3.msra.mxu0 %v643_v48 }
 0x535   : > { %1067 = vmatprep.subr.mxu0 %v1261_v2 }
 0x536   : > { %1068 = vmatpush3.msra.mxu0 %v642_v49 }
 0x537   : > { %1069 = vmatprep.subr.mxu0 %v1261_v2 }
 0x538   : > { %1070 = vmatpush3.msra.mxu0 %v641_v50 }
 0x539   : > { %1071 = vmatprep.subr.mxu0 %v1261_v2 }
 0x53a   : > { %1072 = vmatpush3.msra.mxu0 %v640_v51 }
 0x53b   : > { %1073 = vmatprep.subr.mxu0 %v1261_v2 }
 0x53c   : > { %1074 = vmatpush3.msra.mxu0 %v639_v52 }
 0x53d   : > { %1075 = vmatprep.subr.mxu0 %v1261_v2 }
 0x53e   : > { %1076 = vmatpush3.msra.mxu0 %v638_v53 }
 0x53f   : > { %1077 = vmatprep.subr.mxu0 %v1261_v2 }
 0x540   : > { %1078 = vmatpush3.msra.mxu0 %v637_v54 }
 0x541   : > { %1079 = vmatprep.subr.mxu0 %v1261_v2 }
 0x542   : > { %1080 = vmatpush3.msra.mxu0 %v636_v55 }
 0x543   : > { %1081 = vmatprep.subr.mxu0 %v1261_v2 }
 0x544   : > { %1082 = vmatpush3.msra.mxu0 %v635_v56 }
 0x59d   : > { %v612_v39 = vpop.permute.xlu1 %611 }
 0x59e   : > { %v614_v40 = vadd.f32 %v612_v39, %v596_v31 }
 0x5a0   : > { %1141 = vtanh.f32 %v614_v40 }
 0x5a1   : > { %v624_v57 = vpop.permute.xlu1 %623 }
 0x5a2   : > { %v626_v60 = vmul.f32 %v1471_v36, %v624_v57 }
 0x5ad   : > { %v1142_v46 = vpop.eup %1141 }
 0x5ae   : > { %618 = vrot.lane.b32.xlu0 %v1142_v46, %s1265_s29 }
 0x620   : > { %v619_v59 = vpop.permute.xlu0 %618 }
 0x621   : > { %v621_v61 = vmul.f32 %v619_v59, %v616_v58 }
 0x623   : > { %v627_v62 = vadd.f32 %v626_v60, %v621_v61 }
 0x625   : > { %629 = vrot.lane.b32.xlu1 %v627_v62, %s1265_s29 }
 0x697   : > { %v630_v63 = vpop.permute.xlu1 %629 }
 0x698   : > { %633 = vst.msk [vmem:[#allocation2] sm:$0x1] %vm632_vm2, %v630_v63 }
 0x69f   : > { %v634_v0 = vld [vmem:[#allocation2] sm:$0x1] }
 0x6a0   : > { %1084 = vmatmul.mubr.f32.vlgmr.msra.gmra.mxu0 %v634_v0  ;;  %736 = vst [vmem:[%s1371_s22 + $0x1] sm:$0x1] %v634_v0 }
 0x760   : > { %v718_v3 = vpop.f32.mrf.mxu0 }
 0x761   : > { %v719_v4 = vadd.f32 %v718_v3, %v651_v1 }
 0x762   : > { %v1085_v2 = vpop.f32.mrf.mxu0 }
 0x763   : > { %v722_v5 = vsel %vm325_vm1, %v719_v4, -inf }
 0x764   : > { %723 = vmax.xlane.f32.xlu1 %v722_v5 }
 0x7ed   : > { %v724_v6 = vpop.xlane.xlu1 %723 }
 0x7ee   : > { %v725_v7 = vsub.f32 %v719_v4, %v724_v6 }
 0x7f0   : > { %v726_v8 = vmul.f32 1.442695, %v725_v7 }
 0x7f2   : > { %1143 = vpow2.f32 %v726_v8 }
 0x7ff   : > { %v1144_v9 = vpop.eup %1143 }
 0x800   : > { %v728_v10 = vsel %vm325_vm1, %v1144_v9, 0.0 }
 0x801   : > { %729 = vadd.xlane.f32.xlu0 %v728_v10 }
 0x88a   : > { %v730_v11 = vpop.xlane.xlu0 %729 }
 0x88b   : > { %1145 = vlog2.f32 %v730_v11 }
 0x898   : > { %v1146_v12 = vpop.eup %1145 }
 0x899   : > { %v732_v13 = vmul.f32 0.6931472, %v1146_v12 }
 0x89b   : > { %v733_v14 = vsub.f32 %v725_v7, %v732_v13 }
 0x89d   : > { %735 = vst [vmem:[%s1371_s22] sm:$0x1] %v733_v14 }
 0x89e PF: > { %s23_s23 = sadd.s32 1, %s1253_s23  }
 0x89f   : > { %p20_p8 = scmp.ge.s32.totalorder %s23_s23, 10  }
 0x8a1   :  { %22 = sbr.rel (!%p20_p8) target bundleno = 17 (0x11), region = 81 }
 0x8a6   :  { %757 = vsyncpa [#allocation6], 1 }
 0x8a7   :  { %759 = vsyncpa [#allocation6 + $0x1], 1 }
 0x8a8   :  { %760 = vsyncpa [#allocation8], 1 }

</bundles_post_ra>
